<compile_context>
chip_gen: v6e
topology: v6e:2x2x1
jax: 0.10.0
libtpu: 0.0.40
codegen_flags: <defaults>
</compile_context>

<pallas_src>
import functools

import jax
import jax.numpy as jnp
from jax.experimental import pallas as pl
from jax.experimental.pallas import tpu as pltpu


def _pose_fwd_kernel(x_ref, wc_ref, bc_ref, wf_ref, bf_ref, o_ref):
    # x_ref : (tile_B, S*T, K*Cin)  bf16  im2col'd, zero-padded pose windows
    # wc_ref: (K*Cin, Cout)         bf16  conv1d weight, tap-major im2col layout
    # bc_ref: (1, Cout)             f32   conv1d bias
    # wf_ref: (Cout, NC_pad)        f32   new_fc weight (transposed, lane-padded)
    # bf_ref: (1, NC_pad)           f32   new_fc bias (lane-padded)
    # o_ref : (tile_B, 1, NC_pad)   f32   avg-consensus logits per video
    tb, st, kc = x_ref.shape
    cout = wc_ref.shape[1]

    # Conv1d over all videos/segments/time-steps of the tile: one MXU matmul,
    # bf16 operands, f32 accumulation.
    x = x_ref[...].reshape(tb * st, kc)
    h = jnp.dot(x, wc_ref[...], preferred_element_type=jnp.float32)      # (tb*S*T, Cout)
    h = jnp.maximum(h + bc_ref[...], 0.0)                                # bias + ReLU (VPU, f32)

    # Fused global-average-pool over time AND avg consensus over segments:
    # mean over the whole S*T axis per video (XLU sublane reduction).
    pooled = jnp.mean(h.reshape(tb, st, cout), axis=1)                   # (tile_B, Cout)

    # new_fc folded after the consensus mean (exact): (tile_B, Cout) @ (Cout, NC_pad)
    logits = jnp.dot(pooled, wf_ref[...],
                     preferred_element_type=jnp.float32) + bf_ref[...]   # (tile_B, NC_pad)

    o_ref[...] = logits.reshape(o_ref.shape)


@functools.partial(jax.jit,
                   static_argnames=("num_segments", "kernel_size", "padding", "tile_b"))
def video_model_poses_forward(input_pose, w_conv, b_conv, w_fc, b_fc,
                              *, num_segments, kernel_size=3, padding=1, tile_b=128):
    """input_pose: (B*num_segments, C_pose, T)  -- PyTorch Conv1d NCT layout.
    Returns (B, 1, num_class), matching ConsensusModule('avg') with keepdim."""
    NS, Cin, T = input_pose.shape
    assert NS % num_segments == 0
    B = NS // num_segments
    S = num_segments
    K = kernel_size
    Cout = w_conv.shape[0]
    NC = w_fc.shape[0]
    assert w_conv.shape == (Cout, Cin, K)
    assert w_fc.shape == (NC, Cout)

    # --- glue (runs once in XLA): layout + padding + im2col unfold ------------------
    x = input_pose.reshape(B, S, Cin, T).transpose(0, 1, 3, 2)            # (B, S, T, Cin)
    xp = jnp.pad(x, ((0, 0), (0, 0), (padding, padding), (0, 0)))         # (B, S, T+2p, Cin)
    # im2col: x_unf[b, s*T + t, k*Cin + c] = xp[b, s, t + k, c]
    x_unf = jnp.stack([xp[:, :, k:k + T, :] for k in range(K)], axis=3)   # (B, S, T, K, Cin)
    x_unf = x_unf.reshape(B, S * T, K * Cin).astype(jnp.bfloat16)

    # Batch-axis tiling: amortize per-grid-step overhead; keep >= 2 blocks when B >= 2
    # so v7x's two TensorCores both get a share of the 'parallel' grid axis.
    if B >= 2:
        tile_b_eff = max(1, min(tile_b, B // 2))
    else:
        tile_b_eff = 1
    B_pad = ((B + tile_b_eff - 1) // tile_b_eff) * tile_b_eff
    if B_pad != B:
        x_unf = jnp.pad(x_unf, ((0, B_pad - B), (0, 0), (0, 0)))
    grid_b = B_pad // tile_b_eff

    # Lane-dense output: pad the class axis to a full 128-lane multiple.
    NC_pad = ((NC + 127) // 128) * 128

    wc = jnp.transpose(w_conv, (2, 1, 0)).reshape(K * Cin, Cout).astype(jnp.bfloat16)
    bc = b_conv.reshape(1, Cout).astype(jnp.float32)
    wf = jnp.zeros((Cout, NC_pad), jnp.float32).at[:, :NC].set(w_fc.T.astype(jnp.float32))
    bf = jnp.zeros((1, NC_pad), jnp.float32).at[:, :NC].set(b_fc.astype(jnp.float32))

    ST = S * T
    KC = K * Cin

    out = pl.pallas_call(
        _pose_fwd_kernel,
        out_shape=jax.ShapeDtypeStruct((B_pad, 1, NC_pad), jnp.float32),
        grid_spec=pltpu.PrefetchScalarGridSpec(
            num_scalar_prefetch=0,
            grid=(grid_b,),
            in_specs=[
                pl.BlockSpec((tile_b_eff, ST, KC), lambda b: (b, 0, 0)),
                pl.BlockSpec((KC, Cout), lambda b: (0, 0)),
                pl.BlockSpec((1, Cout), lambda b: (0, 0)),
                pl.BlockSpec((Cout, NC_pad), lambda b: (0, 0)),
                pl.BlockSpec((1, NC_pad), lambda b: (0, 0)),
            ],
            out_specs=pl.BlockSpec((tile_b_eff, 1, NC_pad), lambda b: (b, 0, 0)),
        ),
        compiler_params=pltpu.CompilerParams(dimension_semantics=("parallel",)),
    )(x_unf, wc, bc, wf, bf)

    return out[:B, :, :NC]                                                 # (B, 1, NC)


def _reference_forward(input_pose, w_conv, b_conv, w_fc, b_fc, *, num_segments, padding=1):
    """Plain-JAX f32 reference replicating the same math (conv1d -> relu -> GAP -> fc -> avg)."""
    NS, Cin, T = input_pose.shape
    B = NS // num_segments
    Cout, _, K = w_conv.shape
    x = input_pose.reshape(B, num_segments, Cin, T).transpose(0, 1, 3, 2)
    x = jnp.pad(x, ((0, 0), (0, 0), (padding, padding), (0, 0)))
    acc = jnp.zeros((B, num_segments, T, Cout), jnp.float32)
    wkt = jnp.transpose(w_conv, (2, 1, 0))
    for k in range(K):
        acc = acc + jnp.einsum('bstc,cd->bstd', x[:, :, k:k + T, :], wkt[k])
    h = jax.nn.relu(acc + b_conv)
    feat = jnp.mean(h, axis=2)                                    # (B, S, Cout)
    logits = jnp.einsum('bsc,nc->bsn', feat, w_fc) + b_fc         # (B, S, NC)
    return jnp.mean(logits, axis=1, keepdims=True)                # (B, 1, NC)


if __name__ == "__main__":
    # Small, deterministic example shapes.
    B = 4              # videos
    num_segments = 4   # temporal segments per video
    C_pose = 8         # pose channels (e.g. joints x coords)
    T = 16             # frames per segment
    feature_dim = 32   # PoseModelConv1D.feature_dim
    num_class = 10
    K = 3

    key = jax.random.PRNGKey(0)
    k1, k2, k3, k4, k5 = jax.random.split(key, 5)

    # Parameter shapes follow the module's __init__ (new_fc std=0.001 per _prepare_model).
    w_conv = 0.1 * jax.random.normal(k1, (feature_dim, C_pose, K), dtype=jnp.float32)
    b_conv = 0.05 * jax.random.normal(k4, (feature_dim,), dtype=jnp.float32)
    w_fc = 0.001 * jax.random.normal(k2, (num_class, feature_dim), dtype=jnp.float32)
    b_fc = 0.01 * jax.random.normal(k5, (num_class,), dtype=jnp.float32)

    # input_pose mimics the PyTorch Conv1d input: (B*num_segments, C_pose, T)
    input_pose = jax.random.normal(k3, (B * num_segments, C_pose, T), dtype=jnp.float32)

    out = video_model_poses_forward(input_pose, w_conv, b_conv, w_fc, b_fc,
                                    num_segments=num_segments, kernel_size=K, padding=1)
    out = jax.block_until_ready(out)

    ref = _reference_forward(input_pose, w_conv, b_conv, w_fc, b_fc,
                             num_segments=num_segments, padding=1)
    assert out.shape == (B, 1, num_class)
    # Kernel uses bf16 inputs/conv-weights on the MXU with f32 accumulation; compare
    # against the pure-f32 reference with a bf16-appropriate tolerance.
    assert jnp.allclose(out, ref, atol=5e-4, rtol=1e-2), float(jnp.max(jnp.abs(out - ref)))

    print("KERNEL_OK")
</pallas_src>

<mosaic_0001>
module attributes {stable_mosaic.version = 11 : i64} {
  func.func @_pose_fwd_kernel(%arg0: i32, %arg1: memref<2x64x24xbf16, #tpu.memory_space<vmem>>, %arg2: memref<24x32xbf16, #tpu.memory_space<vmem>>, %arg3: memref<1x32xf32, #tpu.memory_space<vmem>>, %arg4: memref<32x128xf32, #tpu.memory_space<vmem>>, %arg5: memref<1x128xf32, #tpu.memory_space<vmem>>, %arg6: memref<2x1x128xf32, #tpu.memory_space<vmem>>) attributes {dimension_semantics = [#tpu.dimension_semantics<parallel>], iteration_bounds = array<i64: 2>, scalar_prefetch = 0 : i64, scratch_operands = 0 : i64, tpu.core_type = #tpu.core_type<tc>, window_params = [{transform_indices = @transform_0, window_bounds = array<i64: 2, 64, 24>}, {pipeline_mode = #tpu.pipeline_mode<synchronous>, transform_indices = @transform_1, window_bounds = array<i64: 24, 32>}, {pipeline_mode = #tpu.pipeline_mode<synchronous>, transform_indices = @transform_2, window_bounds = array<i64: 1, 32>}, {pipeline_mode = #tpu.pipeline_mode<synchronous>, transform_indices = @transform_3, window_bounds = array<i64: 32, 128>}, {pipeline_mode = #tpu.pipeline_mode<synchronous>, transform_indices = @transform_4, window_bounds = array<i64: 1, 128>}, {transform_indices = @transform_5, window_bounds = array<i64: 2, 1, 128>}]} {
    %c0 = arith.constant 0 : index
    %c0_0 = arith.constant 0 : index
    %c0_1 = arith.constant 0 : index
    %0 = vector.load %arg1[%c0, %c0_0, %c0_1] : memref<2x64x24xbf16, #tpu.memory_space<vmem>>, vector<2x64x24xbf16>
    %1 = vector.shape_cast %0 : vector<2x64x24xbf16> to vector<128x24xbf16>
    %c0_2 = arith.constant 0 : index
    %c0_3 = arith.constant 0 : index
    %2 = vector.load %arg2[%c0_2, %c0_3] : memref<24x32xbf16, #tpu.memory_space<vmem>>, vector<24x32xbf16>
    %cst = arith.constant dense<0.000000e+00> : vector<128x32xf32>
    %3 = tpu.matmul %1, %2, %cst {dimension_numbers = #tpu.dot_dimension_numbers<[1], [0], [0], [1], [0, 0, 1, 1], [], []>} : vector<128x24xbf16>, vector<24x32xbf16>, vector<128x32xf32> -> vector<128x32xf32>
    %c0_4 = arith.constant 0 : index
    %c0_5 = arith.constant 0 : index
    %4 = vector.load %arg3[%c0_4, %c0_5] : memref<1x32xf32, #tpu.memory_space<vmem>>, vector<1x32xf32>
    %5 = vector.broadcast %4 : vector<1x32xf32> to vector<128x32xf32>
    %6 = arith.addf %3, %5 : vector<128x32xf32>
    %cst_6 = arith.constant 0.000000e+00 : f32
    %7 = vector.broadcast %cst_6 : f32 to vector<128x32xf32>
    %8 = arith.maximumf %6, %7 : vector<128x32xf32>
    %9 = vector.shape_cast %8 : vector<128x32xf32> to vector<2x64x32xf32>
    %cst_7 = arith.constant dense<0.000000e+00> : vector<2x32xf32>
    %10 = vector.multi_reduction <add>, %9, %cst_7 [1] : vector<2x64x32xf32> to vector<2x32xf32>
    %cst_8 = arith.constant 6.400000e+01 : f32
    %11 = vector.broadcast %cst_8 : f32 to vector<2x32xf32>
    %12 = arith.divf %10, %11 : vector<2x32xf32>
    %c0_9 = arith.constant 0 : index
    %c0_10 = arith.constant 0 : index
    %13 = vector.load %arg4[%c0_9, %c0_10] : memref<32x128xf32, #tpu.memory_space<vmem>>, vector<32x128xf32>
    %cst_11 = arith.constant dense<0.000000e+00> : vector<2x128xf32>
    %14 = tpu.matmul %12, %13, %cst_11 {dimension_numbers = #tpu.dot_dimension_numbers<[1], [0], [0], [1], [0, 0, 1, 1], [], []>} : vector<2x32xf32>, vector<32x128xf32>, vector<2x128xf32> -> vector<2x128xf32>
    %c0_12 = arith.constant 0 : index
    %c0_13 = arith.constant 0 : index
    %15 = vector.load %arg5[%c0_12, %c0_13] : memref<1x128xf32, #tpu.memory_space<vmem>>, vector<1x128xf32>
    %16 = vector.broadcast %15 : vector<1x128xf32> to vector<2x128xf32>
    %17 = arith.addf %14, %16 : vector<2x128xf32>
    %18 = vector.shape_cast %17 : vector<2x128xf32> to vector<2x1x128xf32>
    %c0_14 = arith.constant 0 : index
    %c0_15 = arith.constant 0 : index
    %c0_16 = arith.constant 0 : index
    %19 = vector.load %arg6[%c0_14, %c0_15, %c0_16] : memref<2x1x128xf32, #tpu.memory_space<vmem>>, vector<2x1x128xf32>
    tpu.vector_store %arg6[%c0_14, %c0_15, %c0_16], %18 {strides = array<i32>} : memref<2x1x128xf32, #tpu.memory_space<vmem>>, vector<2x1x128xf32>,
    return
  }
  func.func @transform_0(%arg0: i32) -> (i32, i32, i32) {
    %c0_i32 = arith.constant 0 : i32
    %c0_i32_0 = arith.constant 0 : i32
    %c0_i32_1 = arith.constant 0 : i32
    return %arg0, %c0_i32, %c0_i32_0 : i32, i32, i32
  }
  func.func @transform_1(%arg0: i32) -> (i32, i32) {
    %c0_i32 = arith.constant 0 : i32
    %c0_i32_0 = arith.constant 0 : i32
    %c0_i32_1 = arith.constant 0 : i32
    return %c0_i32, %c0_i32_0 : i32, i32
  }
  func.func @transform_2(%arg0: i32) -> (i32, i32) {
    %c0_i32 = arith.constant 0 : i32
    %c0_i32_0 = arith.constant 0 : i32
    %c0_i32_1 = arith.constant 0 : i32
    return %c0_i32, %c0_i32_0 : i32, i32
  }
  func.func @transform_3(%arg0: i32) -> (i32, i32) {
    %c0_i32 = arith.constant 0 : i32
    %c0_i32_0 = arith.constant 0 : i32
    %c0_i32_1 = arith.constant 0 : i32
    return %c0_i32, %c0_i32_0 : i32, i32
  }
  func.func @transform_4(%arg0: i32) -> (i32, i32) {
    %c0_i32 = arith.constant 0 : i32
    %c0_i32_0 = arith.constant 0 : i32
    %c0_i32_1 = arith.constant 0 : i32
    return %c0_i32, %c0_i32_0 : i32, i32
  }
  func.func @transform_5(%arg0: i32) -> (i32, i32, i32) {
    %c0_i32 = arith.constant 0 : i32
    %c0_i32_0 = arith.constant 0 : i32
    %c0_i32_1 = arith.constant 0 : i32
    return %arg0, %c0_i32, %c0_i32_0 : i32, i32, i32
  }
}

</mosaic_0001>

<bundles_post_ra>
// kernel: video_model_poses_forward.1
= control target key start
LH: loop header
LB: loop body
LE: loop exit
PB: predicated region body
PF: predicated region fallthrough
CT: control target
= control target key end

     0   :  { %10 = vsyncpa [#allocation3], 0  ;;  %s1093_s0 = inlined_call_operand.vmem [shape: bf16[4,64,24], index: 0, kind: input, shape index: {}]   ;;  %s1094_s1 = inlined_call_operand.vmem [shape: bf16[24,32], index: 1, kind: input, shape index: {}]   ;;  %s1095_s2 = inlined_call_operand.vmem [shape: f32[1,32], index: 2, kind: input, shape index: {}]   ;;  %s1096_s3 = inlined_call_operand.vmem [shape: f32[32,128], index: 3, kind: input, shape index: {}]   ;;  %s1097_s4 = inlined_call_operand.vmem [shape: f32[1,128], index: 4, kind: input, shape index: {}]   ;;  %s1098_s5 = inlined_call_operand.hbm [shape: f32[4,1,128], index: 5, kind: output, shape index: {}]  }
   0x1   :  { %12 = vsyncpa [#allocation3 + $0x1], 0  ;;  %s925_s18 = smov 0   ;;  %s927_s19 = smov 0  }
   0x2   :  { %s929_s20 = smov 0   ;;  %s931_s21 = smov 0  }
   0x3 LB: > { %s946_s22 = sadd.s32 4294967295, %s887_s21   ;;  %s683_s23 = sadd.s32 4294967294, %s887_s21   ;;  %s887_s21 = sphi %s931_s21, %s1104_s21   ;;  %s883_s20 = sphi %s929_s20, %s1103_s20   ;;  %s879_s19 = sphi %s927_s19, %s1102_s19   ;;  %s875_s18 = sphi %s925_s18, %s1101_s18  }
   0x4   : > { %s950_s24 = sadd.s32 1, %s887_s21   ;;  %s135_s25 = sadd.s32 1, %s883_s20 }
   0x5   : > { %s132_s26 = ssub.s32 %s887_s21, %s950_s24  ;;  %p145_p0 = scmp.ne.s32.totalorder %s883_s20, %s879_s19 }
   0x6   : > { %p133_p1 = scmp.eq.s32.totalorder %s132_s26, 0  ;;  %p146_p2 = scmp.eq.s32.totalorder %s946_s22, 1 }
   0x7   : > { %p151_p3 = scmp.ne.s32.totalorder %s879_s19, %s875_s18  ;;  %p152_p4 = scmp.eq.s32.totalorder %s683_s23, 1 }
   0x8   : > { %s961_s27 = scalar_select %p133_p1, %s883_s20, %s135_s25  }
   0x9   : > { %p963_p5 = por %p146_p2, %p145_p0  ;;  %p967_p6 = por %p152_p4, %p151_p3 }
   0xa   : > { %p686_p7 = scmp.ge.s32.totalorder %s887_s21, 1  ;;  %p192_p8 = scmp.lt.s32.totalorder %s887_s21, 3 }
   0xc   : > { %p193_p9 = pnand %p686_p7, %p192_p8 }
   0xd   : > { %s688_s9 = sshll.u32 (!%p193_p9), %s946_s22, 1  ;;  %s218_s8 = sand.u32 (!%p193_p9), 1, %s879_s19  }
   0xe   : > { %196 = sbr.rel (%p193_p9) target bundleno = 490 (0x1ea), region = 40  ;;  %p222_p10 = scmp.lt.s32.totalorder (!%p193_p9), %s688_s9, 3 }
   0xf   : > { %s720_s14 = sshll.u32 (!%p193_p9), %s946_s22, 5  ;;  %s1053_s23 = scalar_lea.sflag (!%p193_p9), [#allocation3], %s218_s8 }
  0x10   : > { %s1051_s17 = scalar_lea.hbm (!%p193_p9), %s1098_s5, %s720_s14  ;;  %s892_s22 = smov (!%p193_p9), [#allocation2]  }
  0x11   : > { %s831_s26 = sshll.u32 (!%p193_p9), %s892_s22, 4  ;;  %s832_s26 = int_to_ptr.vmem [resolvable:$false] %s831_s26 }
  0x12   : > { %s833_s30 = scalar_lea.vmem (!%p193_p9), %s832_s26, 64 }
  0x13   : > { %v817_v0 = vld [vmem:[%s1094_s1 + $0x8] ss:$0 sps:$4 sm:$0xff]   ;;  %vm330_vm0 = vcmask 1043456   ;;  %v818_v1 = vld [vmem:[%s1094_s1] sm:$0xff]   ;;  %s1106_s9 = smov (!%p222_p10, %s688_s9), 3  ;;  %vm305_vm1 = vcmask 195584  }
  0x14   : > { %771 = vmatprep.subr.msk.bf16.mxu0 %vm330_vm0, %v817_v0  ;;  %v332_v2 = vsel %vm330_vm0, %v817_v0, 0  ;;  %772 = vmatprep.subr.msk.bf16.mxu1 %vm330_vm0, %v817_v0  ;;  %s719_s10 = sshll.u32 %s1106_s9, 5  ;;  %v496_v11 = vld [vmem:[%s1096_s3 + $0x18] sm:$0xff]  ;;  %v889_v12 = vmov 0.0   ;;  %v495_v13 = vld [vmem:[%s1096_s3 + $0x10] sm:$0xff]  ;;  %vm890_vm2 = vmmov 0  }
  0x15   : > { %737 = vmatpush3.bf16.msra.mxu0 %v332_v2  ;;  %769 = vmatpush3.bf16.msra.mxu1 %v332_v2  ;;  %s226_s13 = scalar_lea.vmem %s1093_s0, %s719_s10  ;;  %v494_v14 = vld [vmem:[%s1096_s3 + $0x8] sm:$0xff]  ;;  %v493_v15 = vld [vmem:[%s1096_s3] sm:$0xff]  ;;  %vm447_vm3 = vcmask 261120   ;;  %vm506_vm4 = vcmask 1041409   ;;  %s687_s9 = sshll.u32 %s218_s8, 1 }
  0x16   : > { %738 = vmatprep.subr.bf16.mxu0 %v818_v1  ;;  %768 = vmatprep.subr.bf16.mxu1 %v818_v1  ;;  %v819_v3 = vld [vmem:[%s226_s13] sm:$0xff]   ;;  %v820_v4 = vld [vmem:[%s226_s13 + $0x8] sm:$0xff]   ;;  %v821_v5 = vld [vmem:[%s226_s13 + $0x10] sm:$0xff]   ;;  %s220_s12 = scalar_lea.vmem [#allocation2], %s687_s9 }
  0x17   : > { %740 = vmatprep.mubr.msk.bf16.mxu0 %vm305_vm1, %v819_v3  ;;  %v822_v6 = vld [vmem:[%s226_s13 + $0x18] sm:$0xff]   ;;  %v825_v7 = vld [vmem:[%s226_s13 + $0x30] sm:$0xff]   ;;  %v823_v9 = vld [vmem:[%s226_s13 + $0x20] sm:$0xff]  }
  0x18   : > { %v826_v8 = vld [vmem:[%s226_s13 + $0x38] sm:$0xff]   ;;  %752 = vmatprep.mubr.msk.bf16.mxu1 %vm305_vm1, %v825_v7  ;;  %v824_v10 = vld [vmem:[%s226_s13 + $0x28] sm:$0xff]   ;;  %v1006_v17 = vld [vmem:[%s1095_s2] ss:$0 sm:$0xff]  ;;  %s621_s13 = sshll.u32 %s220_s12, 4  ;;  %s1046_s13 = int_to_ptr.vmem [resolvable:$true] %s621_s13 }
  0x19   : > { %739 = vmatpush3.bf16.msra.mxu0 %v818_v1  ;;  %770 = vmatpush3.bf16.msra.mxu1 %v818_v1  ;;  %s827_s25 = scalar_lea.vmem %s1046_s13, 32  ;;  %p834_p0 = scmp.lt.s32.totalorder %s1046_s13, %s832_s26 }
  0x1a   : > { %756 = vmatprep.subr.mxu1 %v889_v12  ;;  %p828_p11 = scmp.ne.s32.totalorder %s1046_s13, %s827_s25  ;;  %p835_p1 = scmp.lt.s32.totalorder %s833_s30, %s827_s25 }
  0x1c   : > { %741 = vmatmul.mubr.msk.bf16.vlgmr.msra.gmra.mxu0 %vm305_vm1, %v820_v4  ;;  %753 = vmatmul.mubr.msk.bf16.vlgmr.msra.gmra.mxu1 %vm305_vm1, %v826_v8  ;;  %p829_p12 = pnand %p828_p11, %p963_p5  ;;  %p836_p2 = por %p835_p1, %p834_p0 }
  0x1d   : > { %744 = vmatprep.mubr.msk.bf16.mxu0 %vm305_vm1, %v821_v5  ;;  %764 = vmatprep.mubr.msk.f32.mxu1 %vm890_vm2, %v889_v12 }
  0x1e   : > { %757 = vmatpush3.msra.mxu1 %v496_v11  ;;  %p830_p13 = pneg %p829_p12 }
  0x1f   : > { %758 = vmatprep.subr.mxu1 %v889_v12 }
  0x20   : > { %759 = vmatpush3.msra.mxu1 %v495_v13  ;;  %p837_p3 = pnand %p836_p2, %p830_p13 }
  0x21   : > { %760 = vmatprep.subr.mxu1 %v889_v12 }
  0x22   : > { %761 = vmatpush3.msra.mxu1 %v494_v14 }
  0x23   : > { %762 = vmatprep.subr.mxu1 %v889_v12 }
  0x24   : > { %745 = vmatmul.mubr.msk.bf16.gmra.mxu0 %vm305_vm1, %v822_v6  ;;  %763 = vmatpush3.msra.mxu1 %v493_v15 }
  0x25   : > { %748 = vmatprep.mubr.msk.bf16.mxu0 %vm305_vm1, %v823_v9 }
  0x2c   : > { %749 = vmatmul.mubr.msk.bf16.gmra.mxu0 %vm305_vm1, %v824_v10 }
  0xdc   : > { %v742_v16 = vpop.f32.mrf.mxu0  ;;  %v754_v36 = vpop.f32.mrf.mxu1 }
  0xdd   : > { %v377_v21 = vadd.f32 %v742_v16, %v1006_v17  ;;  %v425_v14 = vadd.f32 %v754_v36, %v1006_v17 }
  0xde   : > { %v368_v18 = vpop.f32.mrf.mxu0  ;;  %v416_v46 = vpop.f32.mrf.mxu1 }
  0xdf   : > { %v369_v19 = vadd.f32 %v1006_v17, %v368_v18  ;;  %v433_v27 = vmax.f32 %v377_v21, 0.0  ;;  %v417_v5 = vadd.f32 %v1006_v17, %v416_v46  ;;  %v891_v46 = vmov 1966171168  }
  0xe0   : > { %v743_v20 = vpop.f32.mrf.mxu0  ;;  %v755_v57 = vpop.f32.mrf.mxu1 }
  0xe1   : > { %v431_v23 = vmax.f32 %v369_v19, 0.0  ;;  %v380_v24 = vadd.f32 %v743_v20, %v1006_v17  ;;  %v451_v37 = vsel %vm447_vm3, %v433_v27, 0.0  ;;  %v443_v15 = vmax.f32 %v417_v5, 0.0 }
  0xe2   : > { %v371_v22 = vpop.f32.mrf.mxu0  ;;  %v419_v2 = vpop.f32.mrf.mxu1  ;;  %v428_v20 = vadd.f32 %v755_v57, %v1006_v17 }
  0xe3   : > { %v372_v25 = vadd.f32 %v1006_v17, %v371_v22  ;;  %v448_v30 = vsel %vm447_vm3, %v431_v23, 0.0  ;;  %v434_v31 = vmax.f32 %v380_v24, 0.0  ;;  %v420_v11 = vadd.f32 %v1006_v17, %v419_v2 }
  0xe4   : > { %v746_v26 = vpop.f32.mrf.mxu0  ;;  %v445_v23 = vmax.f32 %v425_v14, 0.0  ;;  %v476_v24 = vsel %vm447_vm3, %v443_v15, 0.0  ;;  %v446_v27 = vmax.f32 %v428_v20, 0.0 }
  0xe5   : > { %v432_v28 = vmax.f32 %v372_v25, 0.0  ;;  %v393_v38 = vadd.f32 %v746_v26, %v1006_v17  ;;  %v453_v42 = vsel %vm447_vm3, %v434_v31, 0.0  ;;  %v444_v21 = vmax.f32 %v420_v11, 0.0 }
  0xe6   : > { %v384_v29 = vpop.f32.mrf.mxu0 }
  0xe7   : > { %v449_v32 = vsel %vm447_vm3, %v432_v28, 0.0  ;;  %v385_v33 = vadd.f32 %v1006_v17, %v384_v29  ;;  %v437_v47 = vmax.f32 %v393_v38, 0.0  ;;  %v478_v28 = vsel %vm447_vm3, %v444_v21, 0.0 }
  0xe8   : > { %v450_v34 = vadd.f32 %v449_v32, %v448_v30  ;;  %v747_v35 = vpop.f32.mrf.mxu0  ;;  %v480_v30 = vsel %vm447_vm3, %v445_v23, 0.0 }
  0xe9   : > { %v435_v39 = vmax.f32 %v385_v33, 0.0  ;;  %v396_v49 = vadd.f32 %v747_v35, %v1006_v17  ;;  %v459_v58 = vsel %vm447_vm3, %v437_v47, 0.0  ;;  %v482_v33 = vsel %vm447_vm3, %v446_v27, 0.0 }
  0xea   : > { %v452_v40 = vadd.f32 %v451_v37, %v450_v34  ;;  %v387_v41 = vpop.f32.mrf.mxu0  ;;  %v582_v47 = vunpack.c.l.s4 %v891_v46 }
  0xeb   : > { %v388_v43 = vadd.f32 %v1006_v17, %v387_v41  ;;  %v455_v48 = vsel %vm447_vm3, %v435_v39, 0.0  ;;  %v438_v59 = vmax.f32 %v396_v49, 0.0 }
  0xec   : > { %v454_v44 = vadd.f32 %v453_v42, %v452_v40  ;;  %v750_v45 = vpop.f32.mrf.mxu0  ;;  %v583_v49 = vunpack.c.0.s8 %v582_v47 }
  0xed   : > { %v436_v50 = vmax.f32 %v388_v43, 0.0  ;;  %v409_v60 = vadd.f32 %v750_v45, %v1006_v17  ;;  %v461_v3 = vsel %vm447_vm3, %v438_v59, 0.0 }
  0xee   : > { %v456_v51 = vadd.f32 %v455_v48, %v454_v44  ;;  %v400_v52 = vpop.f32.mrf.mxu0  ;;  %v584_v48 = vlaneseq }
  0xef   : > { %v457_v53 = vsel %vm447_vm3, %v436_v50, 0.0  ;;  %v401_v54 = vadd.f32 %v1006_v17, %v400_v52  ;;  %v441_v4 = vmax.f32 %v409_v60, 0.0 }
  0xf0   : > { %v458_v55 = vadd.f32 %v457_v53, %v456_v51  ;;  %v751_v56 = vpop.f32.mrf.mxu0  ;;  %v585_v50 = vshrl.u32 %v584_v48, 7  ;;  %v710_v51 = vld [vmem:[%s1097_s4] ss:$0 sm:$0xff] }
  0xf1   : > { %v439_v63 = vmax.f32 %v401_v54, 0.0  ;;  %v412_v0 = vadd.f32 %v751_v56, %v1006_v17  ;;  %v472_v13 = vsel %vm447_vm3, %v441_v4, 0.0 }
  0xf2   : > { %v460_v61 = vadd.f32 %v459_v58, %v458_v55  ;;  %v403_v62 = vpop.f32.mrf.mxu0  ;;  %v586_v52 = vsub.s32 %v583_v49, %v585_v50 }
  0xf3   : > { %v404_v1 = vadd.f32 %v1006_v17, %v403_v62  ;;  %v469_v8 = vsel %vm447_vm3, %v439_v63, 0.0  ;;  %v442_v9 = vmax.f32 %v412_v0, 0.0 }
  0xf4   : > { %v462_v7 = vadd.f32 %v461_v3, %v460_v61 }
  0xf5   : > { %v440_v6 = vmax.f32 %v404_v1, 0.0  ;;  %v474_v19 = vsel %vm447_vm3, %v442_v9, 0.0 }
  0xf6   : > { %v463_v16 = vrot.slane %v462_v7, 4 }
  0xf7   : > { %v470_v10 = vsel %vm447_vm3, %v440_v6, 0.0 }
  0xf8   : > { %v471_v12 = vadd.f32 %v470_v10, %v469_v8  ;;  %v464_v25 = vadd.f32 %v463_v16, %v462_v7 }
  0xfa   : > { %v473_v18 = vadd.f32 %v472_v13, %v471_v12  ;;  %v465_v31 = vrot.slane %v464_v25, 2 }
  0xfc   : > { %v475_v22 = vadd.f32 %v474_v19, %v473_v18  ;;  %v466_v35 = vadd.f32 %v465_v31, %v464_v25 }
  0xfe   : > { %v477_v26 = vadd.f32 %v476_v24, %v475_v22  ;;  %v467_v38 = vrot.slane %v466_v35, 1 }
 0x100   : > { %v479_v29 = vadd.f32 %v478_v28, %v477_v26  ;;  %v468_v40 = vadd.f32 %v467_v38, %v466_v35 }
 0x102   : > { %v481_v32 = vadd.f32 %v480_v30, %v479_v29  ;;  %v491_v43 = vmul.f32 0.015625, %v468_v40 }
 0x104   : > { %v483_v34 = vadd.f32 %v482_v33, %v481_v32 }
 0x106   : > { %v484_v17 = vrot.slane %v483_v34, 4 }
 0x108   : > { %v485_v36 = vadd.f32 %v484_v17, %v483_v34 }
 0x10a   : > { %v486_v37 = vrot.slane %v485_v36, 2 }
 0x10c   : > { %v487_v39 = vadd.f32 %v486_v37, %v485_v36 }
 0x10e   : > { %v488_v41 = vrot.slane %v487_v39, 1 }
 0x110   : > { %v489_v42 = vadd.f32 %v488_v41, %v487_v39 }
 0x112   : > { %v492_v44 = vmul.f32 0.015625, %v489_v42 }
 0x114   : > { %v507_v45 = vsel %vm506_vm4, %v492_v44, %v491_v43 }
 0x115   : > { %765 = vmatmul.mubr.msk.f32.vlgmr.msra.gmra.mxu1 %vm447_vm3, %v507_v45 }
 0x1d5   : > { %v576_v53 = vpop.f32.mrf.mxu1 }
 0x1d6   : > { %v577_v54 = vadd.f32 %v710_v51, %v576_v53 }
 0x1d7   : > { %v766_v55 = vpop.f32.mrf.mxu1 }
 0x1d8   : > { %v587_v56 = vrot.slane %v577_v54, %v586_v52 }
 0x1da   : > { %v588_v57 = vcombine.high %v587_v56, %v587_v56  ;;  %712 = vst.sshfl [vmem:[%s220_s12] sm:$0x1 pattern:$0x73625140] %v587_v56 }
 0x1dc   : > { %713 = vst.sshfl [vmem:[%s220_s12 + $0x1] sm:$0x1 pattern:$0x73625140] %v588_v57 }
 0x1dd   : > { %840 = shalt.err (!%p837_p3)
}
 0x1de   : > { %s841_s6 = scalar_lea.hbm %s1051_s17, 32  ;;  %s845_s9 = scalar_lea.hbm %s1098_s5, 64 }
 0x1df   : > { %p842_p4 = scmp.ne.s32.totalorder %s1051_s17, %s841_s6  ;;  %p846_p9 = scmp.lt.s32.totalorder %s1051_s17, %s1098_s5 }
 0x1e0   : > { %p847_p10 = scmp.lt.s32.totalorder %s845_s9, %s841_s6 }
 0x1e1   : > { %p843_p7 = pnand %p842_p4, %p963_p5 }
 0x1e2   : > { %p848_p11 = por %p847_p10, %p846_p9 }
 0x1e3   : > { %p844_p8 = pneg %p843_p7 }
 0x1e5   : > { %p849_p12 = pnand %p848_p11, %p844_p8 }
 0x1e7   : > { %852 = shalt.err (!%p849_p12)
}
 0x1e8   : > { %s893_s12 = smov 16   ;;  %s894_s14 = smov 1  }
 0x1e9   : > { %773 = dma.vmem_to_hbm [thread:$0]  (%p963_p5), %s1046_s13, 32, %s1051_s17, %s1053_s23, %s893_s12, %s893_s12, %s894_s14  }
 0x1ea PF: > { %p779_p13 = scmp.ge.s32.totalorder %s887_s21, 2  ;;  %s636_s15 = sand.u32 1, %s875_s18  }
 0x1eb   : > { %s637_s16 = scalar_lea.sflag [#allocation3], %s636_s15 }
 0x1ec   : > { %p776_p0 = pnand %p779_p13, %p967_p6 }
 0x1ee   : > { %p777_p1 = pneg %p776_p0 }
 0x1f0   : > { %870 = dma.done.wait (%p777_p1), %s637_s16, 32  }
 0x1f1   : > { %872 = vsyncadd (%p777_p1), %s637_s16, 4294967264  ;;  %p15_p2 = scmp.ge.s32.totalorder %s950_s24, 4   ;;  %s1101_s18 = smov %s879_s19 }
 0x1f2   : > { %s1102_s19 = smov %s883_s20  ;;  %s1103_s20 = smov %s961_s27 }
 0x1f3   : > { %s1104_s21 = smov %s950_s24  ;;  %17 = sbr.rel (!%p15_p2) target bundleno = 3 (0x3), region = 75 }
 0x1f8   :  { %642 = vsyncpa [#allocation3], 1 }
 0x1f9   :  { %644 = vsyncpa [#allocation3 + $0x1], 1 }

</bundles_post_ra>
